<compile_context>
chip_gen: v5e
topology: v5e:2x2
jax: 0.10.0
libtpu: 0.0.40
codegen_flags: <defaults>
</compile_context>

<pallas_src>
import functools

import jax
import jax.numpy as jnp
from jax.experimental import pallas as pl
from jax.experimental.pallas import tpu as pltpu

X_DIM = 64
Z_DIM = 8
HIDDEN = 32
BATCH = 16


def encoder_kernel(x_ref, w1_ref, b1_ref, wh_ref, bh_ref, w2_ref, b2_ref, out_ref):
    x = x_ref[...]

    # common trunk: ReLU(x @ W1 + b1)
    common = jnp.maximum(
        jnp.dot(x, w1_ref[...], preferred_element_type=jnp.float32) + b1_ref[...], 0.0
    )

    # fused heads, layer 1: cols [0:H] = mu-head hidden, [H:2H] = log-Sigma-head hidden
    h = jnp.maximum(
        jnp.dot(common, wh_ref[...], preferred_element_type=jnp.float32) + bh_ref[...], 0.0
    )

    # fused heads, layer 2 (block-diagonal weight): cols [0:Z] = mu_z, [Z:2Z] = log_diag_Sigma_z
    out = jnp.dot(h, w2_ref[...], preferred_element_type=jnp.float32) + b2_ref[...]

    # apply exp only to the log-Sigma half; store one packed lane-contiguous block
    lane = jax.lax.broadcasted_iota(jnp.int32, out.shape, 1)
    out_ref[...] = jnp.where(lane < Z_DIM, out, jnp.exp(out))


def _full_spec(shape):
    # whole-array block, same block at every grid step (weights/biases stay VMEM-resident)
    return pl.BlockSpec(shape, lambda i: tuple(0 for _ in shape))


def pack_params(params):
    """Fuse the two head branches into wide / block-diagonal weights (done once, outside the kernel)."""
    (w_e1, b_e1, w_mu1, b_mu1, w_mu2, b_mu2, w_ls1, b_ls1, w_ls2, b_ls2) = params
    wh = jnp.concatenate([w_mu1, w_ls1], axis=1)                     # [H, 2H]
    bh = jnp.concatenate([b_mu1, b_ls1], axis=1)                     # [1, 2H]
    w2 = jnp.zeros((2 * HIDDEN, 2 * Z_DIM), jnp.float32)
    w2 = w2.at[:HIDDEN, :Z_DIM].set(w_mu2).at[HIDDEN:, Z_DIM:].set(w_ls2)  # block-diag [2H, 2Z]
    b2 = jnp.concatenate([b_mu2, b_ls2], axis=1)                     # [1, 2Z]
    return (w_e1, b_e1, wh, bh, w2, b2)


@jax.jit
def encoder_forward(x, packed_params):
    """x: [..., X_DIM] float32  ->  (mu_z [B, Z_DIM], diag_Sigma_z [B, Z_DIM])."""
    w1, b1, wh, bh, w2, b2 = packed_params
    x = x.reshape(-1, X_DIM)  # matches torch `x.reshape(-1, x_dim)`
    B = x.shape[0]

    # collapse the grid for small batches; cap the tile for very large ones
    tb = B if B <= 512 else 256
    assert B % tb == 0
    grid = (B // tb,)

    in_specs = [
        pl.BlockSpec((tb, X_DIM), lambda i: (i, 0)),   # x (batch-tiled)
        _full_spec(w1.shape), _full_spec(b1.shape),
        _full_spec(wh.shape), _full_spec(bh.shape),
        _full_spec(w2.shape), _full_spec(b2.shape),
    ]
    out_specs = pl.BlockSpec((tb, 2 * Z_DIM), lambda i: (i, 0))
    out_shape = jax.ShapeDtypeStruct((B, 2 * Z_DIM), jnp.float32)

    packed_out = pl.pallas_call(
        encoder_kernel,
        out_shape=out_shape,
        grid=grid,
        in_specs=in_specs,
        out_specs=out_specs,
        compiler_params=pltpu.CompilerParams(
            dimension_semantics=("parallel",),   # independent batch tiles (megacore-safe)
        ),
    )(x, w1, b1, wh, bh, w2, b2)

    mu_z = packed_out[:, :Z_DIM]
    diag_sigma_z = packed_out[:, Z_DIM:]
    return mu_z, diag_sigma_z


def init_params(key):
    """Deterministic synthetic params; PyTorch nn.Linear shapes transposed to [in, out]."""
    ks = jax.random.split(key, 5)

    def lin(k, fan_in, fan_out):
        bound = 1.0 / jnp.sqrt(fan_in)
        kw, kb = jax.random.split(k)
        w = jax.random.uniform(kw, (fan_in, fan_out), jnp.float32, -bound, bound)
        b = jax.random.uniform(kb, (1, fan_out), jnp.float32, -bound, bound)
        return w, b

    w_e1, b_e1 = lin(ks[0], X_DIM, HIDDEN)     # seq_common[0]
    w_mu1, b_mu1 = lin(ks[1], HIDDEN, HIDDEN)  # seq_mu_z[0]
    w_mu2, b_mu2 = lin(ks[2], HIDDEN, Z_DIM)   # seq_mu_z[2]
    w_ls1, b_ls1 = lin(ks[3], HIDDEN, HIDDEN)  # seq_log_diag_Sigma_z[0]
    w_ls2, b_ls2 = lin(ks[4], HIDDEN, Z_DIM)   # seq_log_diag_Sigma_z[2]

    return (w_e1, b_e1, w_mu1, b_mu1, w_mu2, b_mu2, w_ls1, b_ls1, w_ls2, b_ls2)


def encoder_forward_ref(x, params):
    """Pure-JAX reference of the PyTorch Encoder.forward (for correctness check)."""
    (w_e1, b_e1, w_mu1, b_mu1, w_mu2, b_mu2, w_ls1, b_ls1, w_ls2, b_ls2) = params
    x = x.reshape(-1, X_DIM)
    common = jax.nn.relu(x @ w_e1 + b_e1)
    mu_z = jax.nn.relu(common @ w_mu1 + b_mu1) @ w_mu2 + b_mu2
    diag = jnp.exp(jax.nn.relu(common @ w_ls1 + b_ls1) @ w_ls2 + b_ls2)
    return mu_z, diag


if __name__ == "__main__":
    key = jax.random.PRNGKey(0)
    k_param, k_x = jax.random.split(key, 2)

    params = init_params(k_param)
    packed = pack_params(params)
    x = jax.random.normal(k_x, (BATCH, X_DIM), jnp.float32)

    mu_z, diag_sigma_z = encoder_forward(x, packed)
    jax.block_until_ready((mu_z, diag_sigma_z))

    # correctness check against pure-JAX reference of the original (unfused) module
    r_mu_z, r_diag = encoder_forward_ref(x, params)
    assert mu_z.shape == (BATCH, Z_DIM) and diag_sigma_z.shape == (BATCH, Z_DIM)
    assert jnp.allclose(mu_z, r_mu_z, atol=1e-5, rtol=1e-5)
    assert jnp.allclose(diag_sigma_z, r_diag, atol=1e-5, rtol=1e-5)

    print("KERNEL_OK")
</pallas_src>

<mosaic_0001>
module attributes {stable_mosaic.version = 11 : i64} {
  func.func @encoder_kernel(%arg0: i32, %arg1: memref<16x64xf32, #tpu.memory_space<vmem>>, %arg2: memref<64x32xf32, #tpu.memory_space<vmem>>, %arg3: memref<1x32xf32, #tpu.memory_space<vmem>>, %arg4: memref<32x64xf32, #tpu.memory_space<vmem>>, %arg5: memref<1x64xf32, #tpu.memory_space<vmem>>, %arg6: memref<64x16xf32, #tpu.memory_space<vmem>>, %arg7: memref<1x16xf32, #tpu.memory_space<vmem>>, %arg8: memref<16x16xf32, #tpu.memory_space<vmem>>) attributes {dimension_semantics = [#tpu.dimension_semantics<parallel>], iteration_bounds = array<i64: 1>, scalar_prefetch = 0 : i64, scratch_operands = 0 : i64, tpu.core_type = #tpu.core_type<tc>, window_params = [{transform_indices = @transform_0, window_bounds = array<i64: 16, 64>}, {pipeline_mode = #tpu.pipeline_mode<synchronous>, transform_indices = @transform_1, window_bounds = array<i64: 64, 32>}, {pipeline_mode = #tpu.pipeline_mode<synchronous>, transform_indices = @transform_2, window_bounds = array<i64: 1, 32>}, {pipeline_mode = #tpu.pipeline_mode<synchronous>, transform_indices = @transform_3, window_bounds = array<i64: 32, 64>}, {pipeline_mode = #tpu.pipeline_mode<synchronous>, transform_indices = @transform_4, window_bounds = array<i64: 1, 64>}, {pipeline_mode = #tpu.pipeline_mode<synchronous>, transform_indices = @transform_5, window_bounds = array<i64: 64, 16>}, {pipeline_mode = #tpu.pipeline_mode<synchronous>, transform_indices = @transform_6, window_bounds = array<i64: 1, 16>}, {transform_indices = @transform_7, window_bounds = array<i64: 16, 16>}]} {
    %c0 = arith.constant 0 : index
    %c0_0 = arith.constant 0 : index
    %0 = vector.load %arg1[%c0, %c0_0] : memref<16x64xf32, #tpu.memory_space<vmem>>, vector<16x64xf32>
    %c0_1 = arith.constant 0 : index
    %c0_2 = arith.constant 0 : index
    %1 = vector.load %arg2[%c0_1, %c0_2] : memref<64x32xf32, #tpu.memory_space<vmem>>, vector<64x32xf32>
    %cst = arith.constant dense<0.000000e+00> : vector<16x32xf32>
    %2 = tpu.matmul %0, %1, %cst {dimension_numbers = #tpu.dot_dimension_numbers<[1], [0], [0], [1], [0, 0, 1, 1], [], []>} : vector<16x64xf32>, vector<64x32xf32>, vector<16x32xf32> -> vector<16x32xf32>
    %c0_3 = arith.constant 0 : index
    %c0_4 = arith.constant 0 : index
    %3 = vector.load %arg3[%c0_3, %c0_4] : memref<1x32xf32, #tpu.memory_space<vmem>>, vector<1x32xf32>
    %4 = vector.broadcast %3 : vector<1x32xf32> to vector<16x32xf32>
    %5 = arith.addf %2, %4 : vector<16x32xf32>
    %cst_5 = arith.constant 0.000000e+00 : f32
    %6 = vector.broadcast %cst_5 : f32 to vector<16x32xf32>
    %7 = arith.maximumf %5, %6 : vector<16x32xf32>
    %c0_6 = arith.constant 0 : index
    %c0_7 = arith.constant 0 : index
    %8 = vector.load %arg4[%c0_6, %c0_7] : memref<32x64xf32, #tpu.memory_space<vmem>>, vector<32x64xf32>
    %cst_8 = arith.constant dense<0.000000e+00> : vector<16x64xf32>
    %9 = tpu.matmul %7, %8, %cst_8 {dimension_numbers = #tpu.dot_dimension_numbers<[1], [0], [0], [1], [0, 0, 1, 1], [], []>} : vector<16x32xf32>, vector<32x64xf32>, vector<16x64xf32> -> vector<16x64xf32>
    %c0_9 = arith.constant 0 : index
    %c0_10 = arith.constant 0 : index
    %10 = vector.load %arg5[%c0_9, %c0_10] : memref<1x64xf32, #tpu.memory_space<vmem>>, vector<1x64xf32>
    %11 = vector.broadcast %10 : vector<1x64xf32> to vector<16x64xf32>
    %12 = arith.addf %9, %11 : vector<16x64xf32>
    %cst_11 = arith.constant 0.000000e+00 : f32
    %13 = vector.broadcast %cst_11 : f32 to vector<16x64xf32>
    %14 = arith.maximumf %12, %13 : vector<16x64xf32>
    %c0_12 = arith.constant 0 : index
    %c0_13 = arith.constant 0 : index
    %15 = vector.load %arg6[%c0_12, %c0_13] : memref<64x16xf32, #tpu.memory_space<vmem>>, vector<64x16xf32>
    %cst_14 = arith.constant dense<0.000000e+00> : vector<16x16xf32>
    %16 = tpu.matmul %14, %15, %cst_14 {dimension_numbers = #tpu.dot_dimension_numbers<[1], [0], [0], [1], [0, 0, 1, 1], [], []>} : vector<16x64xf32>, vector<64x16xf32>, vector<16x16xf32> -> vector<16x16xf32>
    %c0_15 = arith.constant 0 : index
    %c0_16 = arith.constant 0 : index
    %17 = vector.load %arg7[%c0_15, %c0_16] : memref<1x16xf32, #tpu.memory_space<vmem>>, vector<1x16xf32>
    %18 = vector.broadcast %17 : vector<1x16xf32> to vector<16x16xf32>
    %19 = arith.addf %16, %18 : vector<16x16xf32>
    %20 = tpu.iota {dimensions = array<i32: 1>} : vector<16x16xi32>
    %c8_i32 = arith.constant 8 : i32
    %21 = vector.broadcast %c8_i32 : i32 to vector<16x16xi32>
    %22 = arith.cmpi slt, %20, %21 : vector<16x16xi32>
    %23 = math.exp %19 : vector<16x16xf32>
    %24 = arith.select %22, %19, %23 : vector<16x16xi1>, vector<16x16xf32>
    %c0_17 = arith.constant 0 : index
    %c0_18 = arith.constant 0 : index
    %25 = vector.load %arg8[%c0_17, %c0_18] : memref<16x16xf32, #tpu.memory_space<vmem>>, vector<16x16xf32>
    tpu.vector_store %arg8[%c0_17, %c0_18], %24 {strides = array<i32>} : memref<16x16xf32, #tpu.memory_space<vmem>>, vector<16x16xf32>,
    return
  }
  func.func @transform_0(%arg0: i32) -> (i32, i32) {
    %c0_i32 = arith.constant 0 : i32
    %c0_i32_0 = arith.constant 0 : i32
    return %arg0, %c0_i32 : i32, i32
  }
  func.func @transform_1(%arg0: i32) -> (i32, i32) {
    %c0_i32 = arith.constant 0 : i32
    %c0_i32_0 = arith.constant 0 : i32
    %c0_i32_1 = arith.constant 0 : i32
    return %c0_i32, %c0_i32_0 : i32, i32
  }
  func.func @transform_2(%arg0: i32) -> (i32, i32) {
    %c0_i32 = arith.constant 0 : i32
    %c0_i32_0 = arith.constant 0 : i32
    %c0_i32_1 = arith.constant 0 : i32
    return %c0_i32, %c0_i32_0 : i32, i32
  }
  func.func @transform_3(%arg0: i32) -> (i32, i32) {
    %c0_i32 = arith.constant 0 : i32
    %c0_i32_0 = arith.constant 0 : i32
    %c0_i32_1 = arith.constant 0 : i32
    return %c0_i32, %c0_i32_0 : i32, i32
  }
  func.func @transform_4(%arg0: i32) -> (i32, i32) {
    %c0_i32 = arith.constant 0 : i32
    %c0_i32_0 = arith.constant 0 : i32
    %c0_i32_1 = arith.constant 0 : i32
    return %c0_i32, %c0_i32_0 : i32, i32
  }
  func.func @transform_5(%arg0: i32) -> (i32, i32) {
    %c0_i32 = arith.constant 0 : i32
    %c0_i32_0 = arith.constant 0 : i32
    %c0_i32_1 = arith.constant 0 : i32
    return %c0_i32, %c0_i32_0 : i32, i32
  }
  func.func @transform_6(%arg0: i32) -> (i32, i32) {
    %c0_i32 = arith.constant 0 : i32
    %c0_i32_0 = arith.constant 0 : i32
    %c0_i32_1 = arith.constant 0 : i32
    return %c0_i32, %c0_i32_0 : i32, i32
  }
  func.func @transform_7(%arg0: i32) -> (i32, i32) {
    %c0_i32 = arith.constant 0 : i32
    %c0_i32_0 = arith.constant 0 : i32
    return %arg0, %c0_i32 : i32, i32
  }
}

</mosaic_0001>

<bundles_post_ra>
// kernel: encoder_forward.1
= control target key start
LH: loop header
LB: loop body
LE: loop exit
PB: predicated region body
PF: predicated region fallthrough
CT: control target
= control target key end

     0   :  { %vm40_vm0 = vcmask 523264   ;;  %vm80_vm1 = vcmask 261120   ;;  %v153_v39 = vlaneseq  ;;  %vm162_vm3 = vcmask 130048   ;;  %s315_s1 = inlined_call_operand.vmem [shape: f32[64,32], index: 1, kind: input, shape index: {}]   ;;  %s316_s3 = inlined_call_operand.vmem [shape: f32[32,64], index: 3, kind: input, shape index: {}]   ;;  %s317_s2 = inlined_call_operand.vmem [shape: f32[1,32], index: 2, kind: input, shape index: {}]   ;;  %s318_s0 = inlined_call_operand.vmem [shape: f32[16,64], index: 0, kind: input, shape index: {}]   ;;  %s319_s4 = inlined_call_operand.vmem [shape: f32[1,64], index: 4, kind: input, shape index: {}]   ;;  %s320_s5 = inlined_call_operand.vmem [shape: f32[64,16], index: 5, kind: input, shape index: {}]   ;;  %s321_s6 = inlined_call_operand.vmem [shape: f32[1,16], index: 6, kind: input, shape index: {}]   ;;  %s322_s7 = inlined_call_operand.vmem [shape: f32[16,16], index: 7, kind: output, shape index: {}]  }
   0x1   :  { %v35_v0 = vld [vmem:[%s315_s1 + $0x38] sm:$0xff]  ;;  %v34_v1 = vld [vmem:[%s315_s1 + $0x30] sm:$0xff]  ;;  %v33_v2 = vld [vmem:[%s315_s1 + $0x28] sm:$0xff] }
   0x2   :  { %55 = vmatpush.msra.mxu0 %v35_v0  ;;  %175 = vmatpush.msra.mxu3 %v35_v0  ;;  %v75_v3 = vld [vmem:[%s316_s3 + $0x18] sm:$0xff]  ;;  %v32_v4 = vld [vmem:[%s315_s1 + $0x20] sm:$0xff]  ;;  %v30_v6 = vld [vmem:[%s315_s1 + $0x10] sm:$0xff]  ;;  %v154_v41 = vand.u32 127, %v153_v39 }
   0x3   :  { %99 = vmatpush.msra.mxu1 %v75_v3  ;;  %v31_v5 = vld [vmem:[%s315_s1 + $0x18] sm:$0xff]  ;;  %v29_v7 = vld [vmem:[%s315_s1 + $0x8] sm:$0xff]  ;;  %v28_v8 = vld [vmem:[%s315_s1] sm:$0xff] }
   0x4   :  { %56 = vmatpush.msra.mxu0 %v34_v1  ;;  %176 = vmatpush.msra.mxu3 %v34_v1  ;;  %v26_v9 = vld [vmem:[%s318_s0] sm:$0xff]  ;;  %v27_v10 = vld [vmem:[%s318_s0 + $0x8] sm:$0xff]  ;;  %v74_v11 = vld [vmem:[%s316_s3 + $0x10] sm:$0xff]  ;;  %vm155_vm2 = vcmp.lt.s32.totalorder %v154_v41, 8 }
   0x5   :  { %100 = vmatpush.msra.mxu1 %v74_v11  ;;  %v73_v12 = vld [vmem:[%s316_s3 + $0x8] sm:$0xff]  ;;  %v72_v13 = vld [vmem:[%s316_s3] sm:$0xff]  ;;  %v119_v14 = vld [vmem:[%s320_s5 + $0x38] sm:$0xff] }
   0x6   :  { %57 = vmatpush.msra.mxu0 %v33_v2  ;;  %177 = vmatpush.msra.mxu3 %v33_v2  ;;  %v118_v15 = vld [vmem:[%s320_s5 + $0x30] sm:$0xff]  ;;  %v117_v16 = vld [vmem:[%s320_s5 + $0x28] sm:$0xff]  ;;  %v116_v17 = vld [vmem:[%s320_s5 + $0x20] sm:$0xff] }
   0x7   :  { %101 = vmatpush.msra.mxu1 %v73_v12  ;;  %138 = vmatpush.msra.mxu2 %v119_v14  ;;  %v115_v18 = vld [vmem:[%s320_s5 + $0x18] sm:$0xff]  ;;  %v183_v19 = vld [vmem:[%s317_s2] ss:$0 sm:$0xff]  ;;  %v114_v26 = vld [vmem:[%s320_s5 + $0x10] sm:$0xff] }
   0x8   :  { %58 = vmatpush.msra.mxu0 %v32_v4  ;;  %178 = vmatpush.msra.mxu3 %v32_v4  ;;  %v113_v27 = vld [vmem:[%s320_s5 + $0x8] sm:$0xff]  ;;  %v112_v28 = vld [vmem:[%s320_s5] sm:$0xff] }
   0x9   :  { %102 = vmatpush.msra.mxu1 %v72_v13  ;;  %139 = vmatpush.msra.mxu2 %v118_v15  ;;  %v184_v29 = vld [vmem:[%s319_s4] ss:$0 sm:$0xff] }
   0xa   :  { %59 = vmatpush.msra.mxu0 %v31_v5  ;;  %179 = vmatpush.msra.mxu3 %v31_v5  ;;  %v185_v36 = vld [vmem:[%s321_s6] ss:$0 sm:$0xff] }
   0xb   :  { %140 = vmatpush.msra.mxu2 %v117_v16 }
   0xc   :  { %60 = vmatpush.msra.mxu0 %v30_v6  ;;  %180 = vmatpush.msra.mxu3 %v30_v6 }
   0xd   :  { %141 = vmatpush.msra.mxu2 %v116_v17 }
   0xe   :  { %61 = vmatpush.msra.mxu0 %v29_v7  ;;  %181 = vmatpush.msra.mxu3 %v29_v7 }
   0xf   :  { %142 = vmatpush.msra.mxu2 %v115_v18 }
  0x10   :  { %62 = vmatpush.msra.mxu0 %v28_v8  ;;  %182 = vmatpush.msra.mxu3 %v28_v8 }
  0x11   :  { %169 = vmatmul.msk.f32.vlgmr.msra.gmra.mxu0 %vm40_vm0, %v26_v9  ;;  %170 = vmatmul.msk.f32.vlgmr.msra.gmra.mxu3 %vm40_vm0, %v27_v10 }
  0x12   :  { %143 = vmatpush.msra.mxu2 %v114_v26 }
  0x14   :  { %144 = vmatpush.msra.mxu2 %v113_v27 }
  0x16   :  { %145 = vmatpush.msra.mxu2 %v112_v28 }
  0x8e   :  { %v64_v20 = vpop.f32.mrf.mxu0 }
  0x8f   :  { %v65_v21 = vadd.f32 %v183_v19, %v64_v20 }
  0x91   :  { %v70_v22 = vmax.f32 %v65_v21, 0.0 }
  0x93   :  { %171 = vmatmul.msk.f32.vlgmr.msra.gmra.mxu1 %vm80_vm1, %v70_v22 }
  0x94   :  { %v67_v23 = vpop.f32.mrf.mxu3 }
  0x95   :  { %v68_v24 = vadd.f32 %v183_v19, %v67_v23 }
  0x97   :  { %v71_v25 = vmax.f32 %v68_v24, 0.0 }
  0x9b   :  { %172 = vmatmul.msk.f32.gmra.mxu1 %vm80_vm1, %v71_v25 }
 0x110   :  { %v104_v30 = vpop.f32.mrf.mxu1 }
 0x111   :  { %v105_v31 = vadd.f32 %v184_v29, %v104_v30 }
 0x113   :  { %v110_v32 = vmax.f32 %v105_v31, 0.0 }
 0x115   :  { %173 = vmatmul.msk.f32.vlgmr.msra.gmra.mxu2 %vm40_vm0, %v110_v32 }
 0x118   :  { %v107_v33 = vpop.f32.mrf.mxu1 }
 0x119   :  { %v108_v34 = vadd.f32 %v184_v29, %v107_v33 }
 0x11b   :  { %v111_v35 = vmax.f32 %v108_v34, 0.0 }
 0x11d   :  { %174 = vmatmul.msk.f32.gmra.mxu2 %vm40_vm0, %v111_v35 }
 0x198   :  { %v147_v37 = vpop.f32.mrf.mxu2 }
 0x199   :  { %v148_v38 = vadd.f32 %v185_v36, %v147_v37 }
 0x19b   :  { %v156_v40 = vmul.f32 1.442695, %v148_v38 }
 0x19d   :  { %186 = vpow2.f32 %v156_v40 }
 0x1a0   :  { %v150_v42 = vpop.f32.mrf.mxu2 }
 0x1a1   :  { %v151_v43 = vadd.f32 %v185_v36, %v150_v42 }
 0x1a3   :  { %v187_v44 = vpop.eup %186  ;;  %v158_v45 = vmul.f32 1.442695, %v151_v43 }
 0x1a4   :  { %v160_v46 = vsel %vm155_vm2, %v148_v38, %v187_v44 }
 0x1a5   :  { %163 = vst.msk [vmem:[%s322_s7] sm:$0xff] %vm162_vm3, %v160_v46  ;;  %188 = vpow2.f32 %v158_v45 }
 0x1ab   :  { %v189_v47 = vpop.eup %188 }
 0x1ac   :  { %v161_v48 = vsel %vm155_vm2, %v151_v43, %v189_v47 }
 0x1ad   :  { %164 = vst.msk [vmem:[%s322_s7 + $0x8] sm:$0xff] %vm162_vm3, %v161_v48 }

</bundles_post_ra>
